<compile_context>
chip_gen: v5e
topology: v5e:2x2
jax: 0.10.0
libtpu: 0.0.40
codegen_flags: <defaults>
</compile_context>

<pallas_src>
import jax
import jax.numpy as jnp
from jax.experimental import pallas as pl
from jax.experimental.pallas import tpu as pltpu


def _round_up(x, m):
    return ((x + m - 1) // m) * m


def _patch_embed_kernel(x_ref, w_ref, b_ref, o_ref):
    # x_ref: (TM, K)  bf16 patch tile (streamed over the grid)
    # w_ref: (K, E)   bf16 projection (resident across the grid)
    # b_ref: (1, E)   f32 bias        (resident across the grid)
    acc = jnp.dot(x_ref[...], w_ref[...], preferred_element_type=jnp.float32)
    o_ref[...] = (acc + b_ref[...]).astype(o_ref.dtype)


def patch_embed(x, weight, bias, patch_size, flatten=True, block_m=8192):
    """PatchEmbed.forward.

    x:      [B, C, H, W]            (NCHW, matching PyTorch)
    weight: [embed_dim, C, ph, pw]  (nn.Conv2d weight layout)
    bias:   [embed_dim]
    returns [B, num_patches, embed_dim] if flatten else [B, embed_dim, gh, gw]
    """
    B, C, H, W = x.shape
    ph, pw = patch_size
    assert H % ph == 0 and W % pw == 0, "image size must match patch size"
    gh, gw = H // ph, W // pw
    num_patches = gh * gw
    embed_dim = weight.shape[0]
    K = C * ph * pw
    M = B * num_patches
    out_dtype = x.dtype

    # --- im2col glue: cast first so the fused rearrange writes bf16.
    # [B,C,H,W] -> [B,C,gh,ph,gw,pw] -> [B,gh,gw,C,ph,pw] -> [M, K]
    # TODO(synk): fold this rearrange into the kernel's input DMA (in-kernel
    # (C,ph,gw,pw)->(gw,K) relayout) to save one full HBM pass over x.
    xb = x.astype(jnp.bfloat16)
    patches = (
        xb.reshape(B, C, gh, ph, gw, pw)
        .transpose(0, 2, 4, 1, 3, 5)
        .reshape(M, K)
    )

    w_mat = weight.reshape(embed_dim, K).T.astype(jnp.bfloat16)   # (K, E)
    b_mat = bias.reshape(1, embed_dim).astype(jnp.float32)        # (1, E)

    # --- M tile: as large as the VMEM budget allows.
    resident = K * embed_dim * 2 + embed_dim * 4            # weight + bias
    per_row = 2 * (K * 2 + embed_dim * 4)                   # 2x-buffered in + out
    budget = 20 * 1024 * 1024
    tm = max(8, min(block_m, (budget - resident) // max(per_row, 1)))
    tm = max(8, (tm // 8) * 8)
    tm = min(tm, _round_up(M, 8))
    m_pad = _round_up(M, tm)
    if m_pad != M:
        patches = jnp.pad(patches, ((0, m_pad - M), (0, 0)))
    grid = (m_pad // tm,)

    cost = pl.CostEstimate(
        flops=2 * M * K * embed_dim,
        transcendentals=0,
        bytes_accessed=int(
            m_pad * K * 2                                   # patches read
            + K * embed_dim * 2 + embed_dim * 4             # weight + bias
            + m_pad * embed_dim * jnp.dtype(out_dtype).itemsize  # output write
        ),
    )

    out = pl.pallas_call(
        _patch_embed_kernel,
        out_shape=jax.ShapeDtypeStruct((m_pad, embed_dim), out_dtype),
        grid=grid,
        in_specs=[
            pl.BlockSpec((tm, K), lambda i: (i, 0)),             # streamed patch tile
            pl.BlockSpec((K, embed_dim), lambda i: (0, 0)),      # weight: resident
            pl.BlockSpec((1, embed_dim), lambda i: (0, 0)),      # bias:   resident
        ],
        out_specs=pl.BlockSpec((tm, embed_dim), lambda i: (i, 0)),
        compiler_params=pltpu.CompilerParams(
            dimension_semantics=("parallel",),   # shards patch rows across TCs on v7x
            vmem_limit_bytes=32 * 1024 * 1024,
        ),
        cost_estimate=cost,
    )(patches, w_mat, b_mat)

    if m_pad != M:
        out = out[:M]

    if flatten:
        # matches torch: x.flatten(2).transpose(1, 2) -> [B, num_patches, embed_dim]
        return out.reshape(B, num_patches, embed_dim)
    # [B, embed_dim, gh, gw]
    return out.reshape(B, gh, gw, embed_dim).transpose(0, 3, 1, 2)


if __name__ == "__main__":
    # Small shapes consistent with the module: img_size=16, patch_size=4,
    # in_chans=4, embed_dim=32, batch=2 -> num_patches = 16.
    B, C, H, W = 2, 4, 16, 16
    ph = pw = 4
    embed_dim = 32

    key = jax.random.PRNGKey(0)
    kx, kw, kb = jax.random.split(key, 3)
    x = jax.random.normal(kx, (B, C, H, W), dtype=jnp.float32)
    weight = jax.random.normal(kw, (embed_dim, C, ph, pw), dtype=jnp.float32) * 0.02
    bias = jax.random.normal(kb, (embed_dim,), dtype=jnp.float32) * 0.02

    out = patch_embed(x, weight, bias, (ph, pw), flatten=True)
    out = jax.block_until_ready(out)

    # Cross-check against a plain-JAX reference of the strided conv.
    ref = jax.lax.conv_general_dilated(
        x, weight, window_strides=(ph, pw), padding="VALID",
        dimension_numbers=("NCHW", "OIHW", "NCHW"),
    ) + bias.reshape(1, embed_dim, 1, 1)
    ref = ref.reshape(B, embed_dim, -1).transpose(0, 2, 1)

    assert out.shape == (B, (H // ph) * (W // pw), embed_dim)
    # bf16 inputs -> looser tolerance than pure-f32 (accumulation is still f32).
    assert jnp.allclose(out, ref, atol=2e-2, rtol=2e-2)

    print("KERNEL_OK")
</pallas_src>

<mosaic_0001>
module attributes {stable_mosaic.version = 11 : i64} {
  func.func @_patch_embed_kernel(%arg0: i32, %arg1: memref<32x64xbf16, #tpu.memory_space<vmem>>, %arg2: memref<64x32xbf16, #tpu.memory_space<vmem>>, %arg3: memref<1x32xf32, #tpu.memory_space<vmem>>, %arg4: memref<32x32xf32, #tpu.memory_space<vmem>>) attributes {dimension_semantics = [#tpu.dimension_semantics<parallel>], iteration_bounds = array<i64: 1>, scalar_prefetch = 0 : i64, scratch_operands = 0 : i64, tpu.core_type = #tpu.core_type<tc>, window_params = [{transform_indices = @transform_0, window_bounds = array<i64: 32, 64>}, {pipeline_mode = #tpu.pipeline_mode<synchronous>, transform_indices = @transform_1, window_bounds = array<i64: 64, 32>}, {pipeline_mode = #tpu.pipeline_mode<synchronous>, transform_indices = @transform_2, window_bounds = array<i64: 1, 32>}, {transform_indices = @transform_3, window_bounds = array<i64: 32, 32>}]} {
    %c0 = arith.constant 0 : index
    %c0_0 = arith.constant 0 : index
    %0 = vector.load %arg1[%c0, %c0_0] : memref<32x64xbf16, #tpu.memory_space<vmem>>, vector<32x64xbf16>
    %c0_1 = arith.constant 0 : index
    %c0_2 = arith.constant 0 : index
    %1 = vector.load %arg2[%c0_1, %c0_2] : memref<64x32xbf16, #tpu.memory_space<vmem>>, vector<64x32xbf16>
    %cst = arith.constant dense<0.000000e+00> : vector<32x32xf32>
    %2 = tpu.matmul %0, %1, %cst {dimension_numbers = #tpu.dot_dimension_numbers<[1], [0], [0], [1], [0, 0, 1, 1], [], []>} : vector<32x64xbf16>, vector<64x32xbf16>, vector<32x32xf32> -> vector<32x32xf32>
    %c0_3 = arith.constant 0 : index
    %c0_4 = arith.constant 0 : index
    %3 = vector.load %arg3[%c0_3, %c0_4] : memref<1x32xf32, #tpu.memory_space<vmem>>, vector<1x32xf32>
    %4 = vector.broadcast %3 : vector<1x32xf32> to vector<32x32xf32>
    %5 = arith.addf %2, %4 : vector<32x32xf32>
    %c0_5 = arith.constant 0 : index
    %c0_6 = arith.constant 0 : index
    %6 = vector.load %arg4[%c0_5, %c0_6] : memref<32x32xf32, #tpu.memory_space<vmem>>, vector<32x32xf32>
    tpu.vector_store %arg4[%c0_5, %c0_6], %5 {strides = array<i32>} : memref<32x32xf32, #tpu.memory_space<vmem>>, vector<32x32xf32>,
    return
  }
  func.func @transform_0(%arg0: i32) -> (i32, i32) {
    %c0_i32 = arith.constant 0 : i32
    %c0_i32_0 = arith.constant 0 : i32
    return %arg0, %c0_i32 : i32, i32
  }
  func.func @transform_1(%arg0: i32) -> (i32, i32) {
    %c0_i32 = arith.constant 0 : i32
    %c0_i32_0 = arith.constant 0 : i32
    %c0_i32_1 = arith.constant 0 : i32
    return %c0_i32, %c0_i32_0 : i32, i32
  }
  func.func @transform_2(%arg0: i32) -> (i32, i32) {
    %c0_i32 = arith.constant 0 : i32
    %c0_i32_0 = arith.constant 0 : i32
    %c0_i32_1 = arith.constant 0 : i32
    return %c0_i32, %c0_i32_0 : i32, i32
  }
  func.func @transform_3(%arg0: i32) -> (i32, i32) {
    %c0_i32 = arith.constant 0 : i32
    %c0_i32_0 = arith.constant 0 : i32
    return %arg0, %c0_i32 : i32, i32
  }
}

</mosaic_0001>

<bundles_post_ra>
// kernel: tpu_custom_call.1
= control target key start
LH: loop header
LB: loop body
LE: loop exit
PB: predicated region body
PF: predicated region fallthrough
CT: control target
= control target key end

     0   :  { %s232_s0 = inlined_call_operand.vmem [shape: bf16[32,64], index: 0, kind: input, shape index: {}]   ;;  %s233_s1 = inlined_call_operand.vmem [shape: bf16[64,32], index: 1, kind: input, shape index: {}]   ;;  %s234_s2 = inlined_call_operand.vmem [shape: f32[1,32], index: 2, kind: input, shape index: {}]   ;;  %s235_s3 = inlined_call_operand.hbm [shape: f32[32,32], index: 3, kind: output, shape index: {}]  }
   0x1   :  { %v146_v0 = vld [vmem:[%s233_s1 + $0x18] sm:$0xff]  ;;  %v145_v1 = vld [vmem:[%s233_s1 + $0x10] sm:$0xff] }
   0x2   :  { %77 = vmatpush.bf16.msra.mxu0 %v146_v0  ;;  %147 = vmatpush.bf16.msra.mxu1 %v146_v0 }
   0x3   :  { %8 = vsyncpa [#allocation3], 0  ;;  %v144_v2 = vld [vmem:[%s233_s1 + $0x8] sm:$0xff]  ;;  %v143_v3 = vld [vmem:[%s233_s1] sm:$0xff]  ;;  %vm66_vm0 = vcmask 523264   ;;  %vm92_vm1 = vcmask 261120  }
   0x4   :  { %v141_v4 = vld [vmem:[%s232_s0] sm:$0xff]  ;;  %v142_v5 = vld [vmem:[%s232_s0 + $0x8] sm:$0xff]  ;;  %s181_s1 = smov [#allocation2]   ;;  %s103_s28 = sshll.u32 %s235_s3, 4  ;;  %s104_s28 = int_to_ptr.hbm [resolvable:$true] %s103_s28 }
   0x5   :  { %v154_v6 = vld [vmem:[%s234_s2] ss:$0 sm:$0xff]  ;;  %s101_s0 = sshll.u32 %s181_s1, 4  ;;  %s182_s2 = smov 128   ;;  %s102_s0 = int_to_ptr.vmem [resolvable:$true] %s101_s0 }
   0x6   :  { %78 = vmatpush.bf16.msra.mxu0 %v145_v1  ;;  %148 = vmatpush.bf16.msra.mxu1 %v145_v1  ;;  %s183_s29 = smov 8  }
   0xa   :  { %79 = vmatpush.bf16.msra.mxu0 %v144_v2  ;;  %149 = vmatpush.bf16.msra.mxu1 %v144_v2 }
   0xe   :  { %80 = vmatpush.bf16.msra.mxu0 %v143_v3  ;;  %150 = vmatpush.bf16.msra.mxu1 %v143_v3 }
  0x11   :  { %139 = vmatmul.msk.bf16.vlgmr.msra.gmra.mxu0 %vm66_vm0, %v141_v4  ;;  %140 = vmatmul.msk.bf16.vlgmr.msra.gmra.mxu1 %vm66_vm0, %v142_v5 }
  0x8e   :  { %v82_v7 = vpop.f32.mrf.mxu0  ;;  %v87_v8 = vpop.f32.mrf.mxu1 }
  0x8f   :  { %v83_v9 = vadd.f32 %v154_v6, %v82_v7  ;;  %v88_v10 = vadd.f32 %v154_v6, %v87_v8 }
  0x91   :  { %93 = vst.msk [vmem:[#allocation2] sm:$0xff] %vm92_vm1, %v83_v9 }
  0x92   :  { %95 = vst.msk [vmem:[#allocation2 + $0x10] sm:$0xff] %vm92_vm1, %v88_v10 }
  0x96   :  { %v84_v11 = vpop.f32.mrf.mxu0  ;;  %v89_v12 = vpop.f32.mrf.mxu1 }
  0x97   :  { %v85_v13 = vadd.f32 %v154_v6, %v84_v11  ;;  %v90_v14 = vadd.f32 %v154_v6, %v89_v12 }
  0x99   :  { %94 = vst.msk [vmem:[#allocation2 + $0x8] sm:$0xff] %vm92_vm1, %v85_v13 }
  0x9a   :  { %96 = vst.msk [vmem:[#allocation2 + $0x18] sm:$0xff] %vm92_vm1, %v90_v14 }
  0x9b   :  { %109 = dma.vmem_to_hbm [thread:$0]  %s102_s0, 512, %s104_s28, [#allocation3], %s182_s2, %s182_s2, %s183_s29  }
  0x9c   :  { %179 = dma.done.wait [#allocation3], 512  }
  0x9d   :  { %180 = vsyncadd [#allocation3], 4294966784 }
  0x9e   :  { %114 = vsyncpa [#allocation3], 1 }

</bundles_post_ra>
